<compile_context>
chip_gen: v6e
topology: v6e:2x2x1
jax: 0.10.0
libtpu: 0.0.40
codegen_flags: <defaults>
</compile_context>

<pallas_src>
import functools

import jax
import jax.numpy as jnp
from jax.experimental import pallas as pl
from jax.experimental.pallas import tpu as pltpu

_LANE = 128


def _round_up(x, m):
    return ((x + m - 1) // m) * m


def _cdiv(a, b):
    return -(-a // b)


# ----------------------------------------------------------------------------
# Hardware probing (cached; all failures fall back to conservative defaults).
# ----------------------------------------------------------------------------
@functools.lru_cache(maxsize=None)
def _device_kind():
    try:
        return jax.local_devices()[0].device_kind.lower()
    except Exception:
        return ""


@functools.lru_cache(maxsize=None)
def _physical_vmem_bytes():
    kind = _device_kind()
    phys = None
    try:
        info = pltpu.get_tpu_info()
        phys = getattr(info, "vmem_capacity_bytes", None)
    except Exception:
        phys = None
    if not phys:
        phys = (128 * 1024 * 1024 if ("v5" in kind or "v6" in kind)
                else 64 * 1024 * 1024)   # conservative (v7x-sized) default
    if "v7" in kind:
        phys = min(int(phys), 64 * 1024 * 1024)   # 64 MiB per TensorCore
    return int(phys)


def _vmem_cap_bytes():
    # ~75% of physical VMEM: ~96 MiB on 128 MiB parts (v5e/v6e), 48 MiB on v7x.
    return _physical_vmem_bytes() * 3 // 4


@functools.lru_cache(maxsize=None)
def _tensorcores_per_chip():
    kind = _device_kind()
    return 2 if ("v7" in kind or "v4" in kind) else 1


# ----------------------------------------------------------------------------
# Tiling selection.
# ----------------------------------------------------------------------------
def _tile_vmem_bytes(tm, tn, K, in_bytes, out_bytes):
    # Conservative: everything double-buffered (weight/bias use a constant
    # index_map so they are not re-DMA'd, but two buffers are still allocated)
    # plus 40% headroom for Mosaic-internal scratch.
    raw = 2 * (tm * K * in_bytes + K * tn * in_bytes + tn * 4 + tm * tn * out_bytes)
    return int(1.4 * raw)


def _choose_tiles(M, K, Dp, in_bytes, out_bytes, n_cores, cap, tm_target):
    if n_cores >= 2:
        # 2-TC parts (v7x): split M into a core-balanced, even number of steps
        # so neither TensorCore idles on a tiny remainder block.
        n_steps = n_cores * max(1, _cdiv(M, tm_target * n_cores))
        tm = max(16, min(tm_target, _round_up(_cdiv(M, n_steps), 16)))
    else:
        # Single-TC parts (v5e/v6e): no benefit from forcing >= 2 grid steps.
        tm = max(16, min(tm_target, _round_up(M, 16)))

    tn = Dp
    while _tile_vmem_bytes(tm, tn, K, in_bytes, out_bytes) > cap and tn > _LANE:
        tn = max(_LANE, _round_up(tn // 2, _LANE))
    while _tile_vmem_bytes(tm, tn, K, in_bytes, out_bytes) > cap and tm > 16:
        tm = max(16, _round_up(tm // 2, 16))
    assert _tile_vmem_bytes(tm, tn, K, in_bytes, out_bytes) <= cap, (
        "patch-embed tile footprint exceeds the VMEM budget "
        f"(K={K}, Dp={Dp}, tm={tm}, tn={tn}, cap={cap})")
    return tm, tn


# ----------------------------------------------------------------------------
# Kernel.
# ----------------------------------------------------------------------------
def _patch_embed_kernel(x_ref, w_ref, b_ref, o_ref):
    # x_ref: (tm, K) bf16, w_ref: (K, tn) bf16, b_ref: (1, tn) f32,
    # o_ref: (tm, tn) out_dtype.  bf16 MXU matmul, f32 accumulate + bias add
    # in-register, narrow store.
    acc = jnp.dot(x_ref[...], w_ref[...], preferred_element_type=jnp.float32)
    o_ref[...] = (acc + b_ref[...]).astype(o_ref.dtype)


def patch_embed_matmul(patches, weight_t, bias, *, out_dtype=jnp.bfloat16,
                       tm_target=512):
    """patches: [M, K] bf16, weight_t: [K, Dp] bf16, bias: [Dp] f32 -> [M, Dp].

    Dp must be a multiple of 128 (lane-dense stores).  K may be arbitrary
    (full-extent block along K).  M may be ragged w.r.t. the tile size; the
    last block's out-of-bounds rows are masked on store.
    """
    M, K = patches.shape
    K2, Dp = weight_t.shape
    assert K == K2 and Dp % _LANE == 0

    in_bytes = patches.dtype.itemsize
    out_bytes = jnp.dtype(out_dtype).itemsize
    cap = _vmem_cap_bytes()
    n_cores = _tensorcores_per_chip()
    tm, tn = _choose_tiles(M, K, Dp, in_bytes, out_bytes,
                           n_cores=n_cores, cap=cap, tm_target=tm_target)

    grid_d = pl.cdiv(Dp, tn)
    grid_m = pl.cdiv(M, tm)
    # D outer / M inner: the (large) weight tile stays resident across the M
    # sweep; patches are re-read grid_d times (grid_d is 1 in the common case).
    grid = (grid_d, grid_m)

    bias2d = bias.reshape(1, Dp).astype(jnp.float32)

    footprint = _tile_vmem_bytes(tm, tn, K, in_bytes, out_bytes)
    vmem_limit = int(min(cap, max(32 * 1024 * 1024, footprint)))

    cost = pl.CostEstimate(
        flops=int(2 * M * K * Dp),
        transcendentals=0,
        bytes_accessed=int(M * K * in_bytes * grid_d + K * Dp * in_bytes
                           + Dp * 4 + M * Dp * out_bytes),
    )

    return pl.pallas_call(
        _patch_embed_kernel,
        out_shape=jax.ShapeDtypeStruct((M, Dp), out_dtype),
        grid_spec=pltpu.PrefetchScalarGridSpec(
            num_scalar_prefetch=0,
            grid=grid,
            in_specs=[
                pl.BlockSpec((tm, K), lambda j, i: (i, 0)),
                # Constant block index along the M sweep => weight/bias stay
                # resident in VMEM, no per-step re-DMA.
                pl.BlockSpec((K, tn), lambda j, i: (0, j)),
                pl.BlockSpec((1, tn), lambda j, i: (0, j)),
            ],
            out_specs=pl.BlockSpec((tm, tn), lambda j, i: (i, j)),
        ),
        compiler_params=pltpu.CompilerParams(
            dimension_semantics=("parallel", "parallel"),
            vmem_limit_bytes=vmem_limit,
        ),
        cost_estimate=cost,
    )(patches, weight_t, bias2d)


# ----------------------------------------------------------------------------
# Patch unfold (stays in XLA, fused with the bf16 cast).
# ----------------------------------------------------------------------------
def _unfold_patches(pixel_values, patch_size):
    """[B, T, C, H, W] f32 -> [B*T*nH*nW, C*P*P] bf16 patch rows.

    Row order (b, t, nh, nw); column order (c, i, j) -- identical to the
    flatten order of the Conv2d weight [D, C, P, P].  No K padding here: the
    GEMM uses the true K on both operands.
    """
    B, T, C, H, W = pixel_values.shape
    P = patch_size
    nH, nW = H // P, W // P
    x = pixel_values.astype(jnp.bfloat16)
    x = x.reshape(B * T, C, nH, P, nW, P)
    x = jnp.transpose(x, (0, 2, 4, 1, 3, 5))        # [BT, nH, nW, C, P, P]
    return x.reshape(B * T * nH * nW, C * P * P)    # [M, K]


class RawImagePatchifierPallas:
    """JAX/Pallas equivalent of the PyTorch RawImagePatchifier.

    `out_dtype` defaults to bf16 (explicit API decision, per review): the
    kernel still accumulates in f32 and adds the bias in f32; only the stored
    embeddings are bf16.  Pass out_dtype=jnp.float32 to match the PyTorch
    output dtype at ~2x the output HBM traffic.
    """

    def __init__(self, hidden_size, image_size, patch_size, num_channels, key,
                 out_dtype=jnp.bfloat16):
        assert image_size % patch_size == 0
        self.embed_dim = hidden_size
        self.image_size = image_size
        self.patch_size = patch_size
        self.num_channels = num_channels
        self.num_patches = (image_size // patch_size) ** 2
        self.out_dtype = out_dtype

        # Deterministic init matching nn.Conv2d shapes: weight [D,C,P,P], bias [D].
        kw, kb = jax.random.split(key)
        fan_in = num_channels * patch_size * patch_size
        bound = 1.0 / (fan_in ** 0.5)
        self.weight = jax.random.uniform(
            kw, (hidden_size, num_channels, patch_size, patch_size),
            minval=-bound, maxval=bound, dtype=jnp.float32)
        self.bias = jax.random.uniform(
            kb, (hidden_size,), minval=-bound, maxval=bound, dtype=jnp.float32)

        # Pre-packed GEMM operands: [D,C,P,P] -> [K,D] bf16.  Only D is zero-
        # padded to a multiple of 128 (lane-dense output blocks); K stays at
        # its true size so the big patch tensor needs no padding round-trip.
        # (For real hidden sizes D is already a 128-multiple, so the trailing
        # [:, :D] slice in __call__ is a no-op.)
        K = num_channels * patch_size * patch_size
        self._k = K
        self._d_pad = _round_up(hidden_size, _LANE)
        w = self.weight.reshape(hidden_size, K).T.astype(jnp.bfloat16)  # [K, D]
        self._w_gemm = jnp.pad(w, ((0, 0), (0, self._d_pad - hidden_size)))
        self._b_gemm = jnp.pad(self.bias, (0, self._d_pad - hidden_size))

    def __call__(self, pixel_values, batch_size):
        # pixel_values: [B, T, C, H, W] float32
        B, T, C, H, W = pixel_values.shape
        P, D = self.patch_size, self.embed_dim
        N = (H // P) * (W // P)

        patches = _unfold_patches(pixel_values, P)            # [M, K] bf16
        out = patch_embed_matmul(patches, self._w_gemm, self._b_gemm,
                                 out_dtype=self.out_dtype)    # [M, Dp]
        if self._d_pad != D:
            out = out[:, :D]
        # (b t) n d -> b (t n) d
        return out.reshape(batch_size, T * N, D)


# ----------------------------------------------------------------------------
# References.
# ----------------------------------------------------------------------------
def _reference_conv(pixel_values, weight, bias):
    """Pure-JAX f32 reference using a strided conv (matches PyTorch semantics)."""
    B, T, C, H, W = pixel_values.shape
    D, _, P, _ = weight.shape
    x4 = pixel_values.reshape(B * T, C, H, W)
    y = jax.lax.conv_general_dilated(
        x4, weight, window_strides=(P, P), padding="VALID",
        dimension_numbers=("NCHW", "OIHW", "NCHW"))
    y = y + bias.reshape(1, D, 1, 1)
    BT, _, nH, nW = y.shape
    y = y.reshape(BT, D, nH * nW)            # flatten(2)
    y = jnp.transpose(y, (0, 2, 1))          # transpose(1, 2)
    return y.reshape(B, T * nH * nW, D)      # (b t) n d -> b (t n) d


def _reference_matched(pixel_values, patchifier, batch_size):
    """Same math as the kernel (bf16 operands, f32 accumulate, narrow store)."""
    B, T, C, H, W = pixel_values.shape
    P, D = patchifier.patch_size, patchifier.embed_dim
    N = (H // P) * (W // P)
    patches = _unfold_patches(pixel_values, P)
    out = jnp.dot(patches, patchifier._w_gemm, preferred_element_type=jnp.float32)
    out = out + patchifier._b_gemm.reshape(1, -1).astype(jnp.float32)
    out = out.astype(patchifier.out_dtype)[:, :D]
    return out.reshape(batch_size, T * N, D)


if __name__ == "__main__":
    key = jax.random.PRNGKey(0)
    k_in, k_mod = jax.random.split(key)

    # Small shapes: batch=2, video_horizon=2, channels=4, image=32, patch=8,
    # hidden=32 -> M=64 patch rows, K=256, D padded 32->128.
    B, T, C, H = 2, 2, 4, 32
    patch_size, hidden = 8, 32

    pixel_values = jax.random.normal(k_in, (B, T, C, H, H), dtype=jnp.float32)

    patchifier = RawImagePatchifierPallas(
        hidden_size=hidden, image_size=H, patch_size=patch_size,
        num_channels=C, key=k_mod)

    forward = jax.jit(lambda pv: patchifier(pv, B))
    out = jax.block_until_ready(forward(pixel_values))

    assert out.shape == (B, T * patchifier.num_patches, hidden), out.shape
    assert out.dtype == patchifier.out_dtype, out.dtype

    # Tight check vs. an XLA implementation of the exact same bf16-in /
    # f32-accumulate / bf16-out GEMM (only accumulation order differs).
    matched = _reference_matched(pixel_values, patchifier, B)
    assert jnp.allclose(out.astype(jnp.float32), matched.astype(jnp.float32),
                        atol=3e-2, rtol=3e-2), float(
        jnp.max(jnp.abs(out.astype(jnp.float32) - matched.astype(jnp.float32))))

    # Semantic check vs. the f32 strided conv (bf16 operands + bf16 store =>
    # looser tolerance).
    ref = _reference_conv(pixel_values, patchifier.weight, patchifier.bias)
    assert jnp.allclose(out.astype(jnp.float32), ref,
                        atol=7.5e-2, rtol=7.5e-2), float(
        jnp.max(jnp.abs(out.astype(jnp.float32) - ref)))

    # Exercise the ragged-M path (no explicit pad / slice around pallas_call):
    # M=50 is not a multiple of the 16-row tile granularity, so the last block
    # is partial and its out-of-bounds stores are masked.
    patches_all = _unfold_patches(pixel_values, patch_size)
    patches_sub = patches_all[:50]
    out_sub = jax.block_until_ready(jax.jit(
        lambda p: patch_embed_matmul(p, patchifier._w_gemm,
                                     patchifier._b_gemm))(patches_sub))
    ref_sub = (jnp.dot(patches_sub, patchifier._w_gemm,
                       preferred_element_type=jnp.float32)
               + patchifier._b_gemm.reshape(1, -1)).astype(jnp.bfloat16)
    assert out_sub.shape == (50, patchifier._d_pad), out_sub.shape
    assert jnp.allclose(out_sub.astype(jnp.float32), ref_sub.astype(jnp.float32),
                        atol=3e-2, rtol=3e-2), float(
        jnp.max(jnp.abs(out_sub.astype(jnp.float32) - ref_sub.astype(jnp.float32))))

    print("KERNEL_OK")
</pallas_src>

<mosaic_0001>
module attributes {stable_mosaic.version = 11 : i64} {
  func.func @_patch_embed_kernel(%arg0: i32, %arg1: i32, %arg2: memref<64x256xbf16, #tpu.memory_space<vmem>>, %arg3: memref<256x128xbf16, #tpu.memory_space<vmem>>, %arg4: memref<1x128xf32, #tpu.memory_space<vmem>>, %arg5: memref<64x128xbf16, #tpu.memory_space<vmem>>) attributes {dimension_semantics = [#tpu.dimension_semantics<parallel>, #tpu.dimension_semantics<parallel>], iteration_bounds = array<i64: 1, 1>, scalar_prefetch = 0 : i64, scratch_operands = 0 : i64, tpu.core_type = #tpu.core_type<tc>, window_params = [{transform_indices = @transform_0, window_bounds = array<i64: 64, 256>}, {transform_indices = @transform_1, window_bounds = array<i64: 256, 128>}, {transform_indices = @transform_2, window_bounds = array<i64: 1, 128>}, {transform_indices = @transform_3, window_bounds = array<i64: 64, 128>}]} {
    %c0 = arith.constant 0 : index
    %c0_0 = arith.constant 0 : index
    %0 = vector.load %arg2[%c0, %c0_0] : memref<64x256xbf16, #tpu.memory_space<vmem>>, vector<64x256xbf16>
    %c0_1 = arith.constant 0 : index
    %c0_2 = arith.constant 0 : index
    %1 = vector.load %arg3[%c0_1, %c0_2] : memref<256x128xbf16, #tpu.memory_space<vmem>>, vector<256x128xbf16>
    %cst = arith.constant dense<0.000000e+00> : vector<64x128xf32>
    %2 = tpu.matmul %0, %1, %cst {dimension_numbers = #tpu.dot_dimension_numbers<[1], [0], [0], [1], [0, 0, 1, 1], [], []>} : vector<64x256xbf16>, vector<256x128xbf16>, vector<64x128xf32> -> vector<64x128xf32>
    %c0_3 = arith.constant 0 : index
    %c0_4 = arith.constant 0 : index
    %3 = vector.load %arg4[%c0_3, %c0_4] : memref<1x128xf32, #tpu.memory_space<vmem>>, vector<1x128xf32>
    %4 = vector.broadcast %3 : vector<1x128xf32> to vector<64x128xf32>
    %5 = arith.addf %2, %4 : vector<64x128xf32>
    %6 = arith.truncf %5 : vector<64x128xf32> to vector<64x128xbf16>
    %c0_5 = arith.constant 0 : index
    %c0_6 = arith.constant 0 : index
    %7 = vector.load %arg5[%c0_5, %c0_6] : memref<64x128xbf16, #tpu.memory_space<vmem>>, vector<64x128xbf16>
    tpu.vector_store %arg5[%c0_5, %c0_6], %6 {strides = array<i32>} : memref<64x128xbf16, #tpu.memory_space<vmem>>, vector<64x128xbf16>,
    return
  }
  func.func @transform_0(%arg0: i32, %arg1: i32) -> (i32, i32) {
    %c0_i32 = arith.constant 0 : i32
    %c0_i32_0 = arith.constant 0 : i32
    return %arg1, %c0_i32 : i32, i32
  }
  func.func @transform_1(%arg0: i32, %arg1: i32) -> (i32, i32) {
    %c0_i32 = arith.constant 0 : i32
    %c0_i32_0 = arith.constant 0 : i32
    return %c0_i32, %arg0 : i32, i32
  }
  func.func @transform_2(%arg0: i32, %arg1: i32) -> (i32, i32) {
    %c0_i32 = arith.constant 0 : i32
    %c0_i32_0 = arith.constant 0 : i32
    return %c0_i32, %arg0 : i32, i32
  }
  func.func @transform_3(%arg0: i32, %arg1: i32) -> (i32, i32) {
    %c0_i32 = arith.constant 0 : i32
    return %arg1, %arg0 : i32, i32
  }
}

</mosaic_0001>

<bundles_post_ra>
// kernel: _lambda_.1
= control target key start
LH: loop header
LB: loop body
LE: loop exit
PB: predicated region body
PF: predicated region fallthrough
CT: control target
= control target key end

     0   :  { %s594_s0 = inlined_call_operand.vmem [shape: bf16[64,256], index: 0, kind: input, shape index: {}]   ;;  %s595_s1 = inlined_call_operand.vmem [shape: bf16[256,128], index: 1, kind: input, shape index: {}]   ;;  %s596_s2 = inlined_call_operand.vmem [shape: f32[1,128], index: 2, kind: input, shape index: {}]   ;;  %s597_s3 = inlined_call_operand.hbm [shape: bf16[64,128], index: 3, kind: output, shape index: {}]  }
   0x1   :  { %v443_v0 = vld [vmem:[%s595_s1 + $0x78] sm:$0xff]   ;;  %v445_v2 = vld [vmem:[%s595_s1 + $0x70] sm:$0xff]   ;;  %v447_v4 = vld [vmem:[%s595_s1 + $0x68] sm:$0xff]  }
   0x2   :  { %v444_v1 = vld [vmem:[%s595_s1 + $0x38] sm:$0xff]   ;;  %384 = vmatprep.subr.bf16.mxu0 %v443_v0  ;;  %424 = vmatprep.subr.bf16.mxu1 %v443_v0  ;;  %v446_v3 = vld [vmem:[%s595_s1 + $0x30] sm:$0xff]   ;;  %v448_v5 = vld [vmem:[%s595_s1 + $0x28] sm:$0xff]  }
   0x3   :  { %385 = vmatpush3.bf16.msra.mxu0 %v444_v1  ;;  %432 = vmatpush3.bf16.msra.mxu1 %v444_v1  ;;  %v449_v6 = vld [vmem:[%s595_s1 + $0x60] sm:$0xff]   ;;  %v451_v8 = vld [vmem:[%s595_s1 + $0x58] sm:$0xff]   ;;  %v453_v10 = vld [vmem:[%s595_s1 + $0x50] sm:$0xff]  }
   0x4   :  { %386 = vmatprep.subr.bf16.mxu0 %v445_v2  ;;  %425 = vmatprep.subr.bf16.mxu1 %v445_v2  ;;  %v450_v7 = vld [vmem:[%s595_s1 + $0x20] sm:$0xff]   ;;  %v452_v9 = vld [vmem:[%s595_s1 + $0x18] sm:$0xff]   ;;  %v454_v13 = vld [vmem:[%s595_s1 + $0x10] sm:$0xff]  }
   0x5   :  { %v461_v11 = vld [vmem:[%s594_s0 + $0x4] ss:$8 sps:$4 sm:$0xff]  }
   0x6   :  { %v464_v12 = vld [vmem:[%s594_s0 + $0x24] ss:$8 sps:$4 sm:$0xff]   ;;  %231 = vmatprep.mubr.bf16.mxu0 %v461_v11 }
   0x7   :  { %387 = vmatpush3.bf16.msra.mxu0 %v446_v3  ;;  %433 = vmatpush3.bf16.msra.mxu1 %v446_v3  ;;  %v455_v14 = vld [vmem:[%s595_s1 + $0x48] sm:$0xff]  }
   0x8   :  { %388 = vmatprep.subr.bf16.mxu0 %v447_v4  ;;  %426 = vmatprep.subr.bf16.mxu1 %v447_v4 }
   0x9   :  { %247 = vmatprep.mubr.bf16.mxu1 %v464_v12 }
   0xb   :  { %389 = vmatpush3.bf16.msra.mxu0 %v448_v5  ;;  %434 = vmatpush3.bf16.msra.mxu1 %v448_v5 }
   0xc   :  { %390 = vmatprep.subr.bf16.mxu0 %v449_v6  ;;  %427 = vmatprep.subr.bf16.mxu1 %v449_v6 }
   0xf   :  { %391 = vmatpush3.bf16.msra.mxu0 %v450_v7  ;;  %435 = vmatpush3.bf16.msra.mxu1 %v450_v7 }
  0x10   :  { %392 = vmatprep.subr.bf16.mxu0 %v451_v8  ;;  %428 = vmatprep.subr.bf16.mxu1 %v451_v8 }
  0x13   :  { %393 = vmatpush3.bf16.msra.mxu0 %v452_v9  ;;  %436 = vmatpush3.bf16.msra.mxu1 %v452_v9 }
  0x14   :  { %394 = vmatprep.subr.bf16.mxu0 %v453_v10  ;;  %429 = vmatprep.subr.bf16.mxu1 %v453_v10 }
  0x15   :  { %8 = vsyncpa [#allocation3], 0  ;;  %v456_v15 = vld [vmem:[%s595_s1 + $0x8] sm:$0xff]   ;;  %v457_v16 = vld [vmem:[%s595_s1 + $0x40] sm:$0xff]  }
  0x16   :  { %v458_v17 = vld [vmem:[%s595_s1] sm:$0xff]   ;;  %v465_v20 = vld [vmem:[%s594_s0 + $0x14] ss:$8 sps:$4 sm:$0xff]   ;;  %v469_v22 = vld [vmem:[%s594_s0 + $0x10] ss:$8 sps:$4 sm:$0xff]  }
  0x17   :  { %395 = vmatpush3.bf16.msra.mxu0 %v454_v13  ;;  %437 = vmatpush3.bf16.msra.mxu1 %v454_v13  ;;  %v459_v18 = vld [vmem:[%s594_s0] ss:$8 sps:$4 sm:$0xff]   ;;  %v467_v21 = vld [vmem:[%s594_s0 + $0x34] ss:$8 sps:$4 sm:$0xff]   ;;  %v470_v23 = vld [vmem:[%s594_s0 + $0x30] ss:$8 sps:$4 sm:$0xff]  }
  0x18   :  { %396 = vmatprep.subr.bf16.mxu0 %v455_v14  ;;  %430 = vmatprep.subr.bf16.mxu1 %v455_v14  ;;  %v462_v19 = vld [vmem:[%s594_s0 + $0x20] ss:$8 sps:$4 sm:$0xff]   ;;  %s493_s0 = smov [#allocation2]  }
  0x19   :  { %v320_v32 = vld [vmem:[%s596_s2] ss:$0 sm:$0xff]  ;;  %s309_s2 = sshll.u32 %s493_s0, 4  ;;  %s310_s2 = int_to_ptr.vmem [resolvable:$true] %s309_s2 }
  0x1a   :  { %s471_s7 = scalar_lea.vmem %s310_s2, 512  ;;  %p476_p1 = scmp.lt.s32.totalorder %s310_s2, %s310_s2 }
  0x1b   :  { %397 = vmatpush3.bf16.msra.mxu0 %v456_v15  ;;  %438 = vmatpush3.bf16.msra.mxu1 %v456_v15  ;;  %p472_p0 = scmp.ne.s32.totalorder %s310_s2, %s471_s7  ;;  %p477_p2 = scmp.lt.s32.totalorder %s471_s7, %s471_s7 }
  0x1c   :  { %398 = vmatprep.subr.bf16.mxu0 %v457_v16  ;;  %431 = vmatprep.subr.bf16.mxu1 %v457_v16 }
  0x1d   :  { %p478_p3 = por %p477_p2, %p476_p1 }
  0x1f   :  { %399 = vmatpush3.bf16.msra.mxu0 %v458_v17  ;;  %439 = vmatpush3.bf16.msra.mxu1 %v458_v17  ;;  %p479_p4 = pnand %p478_p3, %p472_p0 }
  0x22   :  { %232 = vmatmul.mubr.bf16.vlgmr.msra.gmra.mxu0 %v459_v18  ;;  %248 = vmatmul.mubr.bf16.vlgmr.msra.gmra.mxu1 %v462_v19 }
  0x23   :  { %239 = vmatprep.mubr.bf16.mxu0 %v465_v20  ;;  %255 = vmatprep.mubr.bf16.mxu1 %v467_v21 }
  0x2a   :  { %240 = vmatmul.mubr.bf16.gmra.mxu0 %v469_v22  ;;  %256 = vmatmul.mubr.bf16.gmra.mxu1 %v470_v23 }
  0xe2   :  { %v400_v24 = vpop.f32.mrf.mxu0  ;;  %v412_v25 = vpop.f32.mrf.mxu1 }
  0xe4   :  { %v401_v26 = vpop.f32.mrf.mxu0  ;;  %v413_v27 = vpop.f32.mrf.mxu1 }
  0xe5   :  { %v402_v30 = vadd.f32 %v401_v26, %v400_v24  ;;  %v414_v31 = vadd.f32 %v413_v27, %v412_v25 }
  0xe6   :  { %v403_v28 = vpop.f32.mrf.mxu0  ;;  %v415_v29 = vpop.f32.mrf.mxu1 }
  0xe7   :  { %v234_v39 = vadd.f32 %v402_v30, %v320_v32  ;;  %v250_v40 = vadd.f32 %v414_v31, %v320_v32 }
  0xe8   :  { %v404_v33 = vpop.f32.mrf.mxu0  ;;  %v416_v34 = vpop.f32.mrf.mxu1 }
  0xe9   :  { %v405_v35 = vadd.f32 %v404_v33, %v403_v28  ;;  %v417_v36 = vadd.f32 %v416_v34, %v415_v29 }
  0xea   :  { %v406_v37 = vpop.f32.mrf.mxu0  ;;  %v418_v38 = vpop.f32.mrf.mxu1 }
  0xeb   :  { %v237_v41 = vadd.f32 %v405_v35, %v320_v32  ;;  %v253_v42 = vadd.f32 %v417_v36, %v320_v32 }
  0xec   :  { %v407_v43 = vpop.f32.mrf.mxu0  ;;  %v419_v44 = vpop.f32.mrf.mxu1 }
  0xed   :  { %v364_v45 = vpack.c.bf16 %v237_v41, %v234_v39  ;;  %v374_v46 = vpack.c.bf16 %v253_v42, %v250_v40  ;;  %v408_v49 = vadd.f32 %v407_v43, %v406_v37  ;;  %v420_v50 = vadd.f32 %v419_v44, %v418_v38 }
  0xee   :  { %v409_v47 = vpop.f32.mrf.mxu0  ;;  %v421_v48 = vpop.f32.mrf.mxu1 }
  0xef   :  { %365 = vst [vmem:[#allocation2] sm:$0xff] %v364_v45   ;;  %382 = vst [vmem:[#allocation2 + $0x10] sm:$0xff] %v374_v46   ;;  %v242_v55 = vadd.f32 %v408_v49, %v320_v32  ;;  %v258_v56 = vadd.f32 %v420_v50, %v320_v32 }
  0xf0   :  { %v410_v51 = vpop.f32.mrf.mxu0  ;;  %v422_v52 = vpop.f32.mrf.mxu1 }
  0xf1   :  { %v411_v53 = vadd.f32 %v410_v51, %v409_v47  ;;  %v423_v54 = vadd.f32 %v422_v52, %v421_v48 }
  0xf3   :  { %v245_v57 = vadd.f32 %v411_v53, %v320_v32  ;;  %v261_v58 = vadd.f32 %v423_v54, %v320_v32 }
  0xf5   :  { %v369_v59 = vpack.c.bf16 %v245_v57, %v242_v55  ;;  %v379_v60 = vpack.c.bf16 %v261_v58, %v258_v56 }
  0xf7   :  { %381 = vst [vmem:[#allocation2 + $0x8] sm:$0xff] %v369_v59   ;;  %383 = vst [vmem:[#allocation2 + $0x18] sm:$0xff] %v379_v60  }
  0xf8   :  { %482 = shalt.err (!%p479_p4)
}
  0xf9   :  { %s494_s8 = smov 64   ;;  %s495_s9 = smov 4  }
  0xfa   :  { %315 = dma.vmem_to_hbm [thread:$0]  %s310_s2, 512, %s597_s3, [#allocation3], %s494_s8, %s494_s8, %s495_s9  }
  0xfb   :  { %491 = dma.done.wait [#allocation3], 512  }
  0xfc   :  { %492 = vsyncadd [#allocation3], 4294966784 }
  0xfd   :  { %319 = vsyncpa [#allocation3], 1 }

</bundles_post_ra>
